<compile_context>
chip_gen: v7x
topology: tpu7x:2x2x1
jax: 0.10.0
libtpu: 0.0.40
codegen_flags: <defaults>
</compile_context>

<pallas_src>
import jax
import jax.numpy as jnp
from jax.experimental import pallas as pl
from jax.experimental.pallas import tpu as pltpu

IN_DIM = 32
H0 = 32          # layers[0] (== in_dim    -> SkipLayer, norm=False)
H1 = 32          # layers[1] (== layers[0] -> SkipLayer, norm=True)
H2 = 64          # layers[2] (!= layers[1] -> LN + Linear + SiLU)
OUT_DIM = 16
D = 128          # padded lane width used for all in-kernel math
BATCH = 16
LN_EPS = 1e-5    # torch.nn.LayerNorm default

# row indices inside the packed [16, 128] bias/gamma/beta slab
_B0, _G1, _BE1, _B1, _G2, _BE2, _B2, _G3, _BE3, _B3 = range(10)
VEC_ROWS = 16    # padded to a sublane multiple


def _silu(x):
    # sigmoid via EUP exp + approximate EUP reciprocal (keeps VALU slots free)
    return x * pl.reciprocal(1.0 + jnp.exp(-x), approx=True)


def _layernorm(x, gamma, beta, dim):
    # One-pass LN. Padded lanes of x are exactly zero, so reducing over all 128
    # lanes and dividing by the true feature width gives exact statistics;
    # gamma/beta are zero-padded so padded lanes stay zero afterwards.
    s = jnp.sum(x, axis=-1, keepdims=True)
    s2 = jnp.sum(x * x, axis=-1, keepdims=True)
    mu = s * (1.0 / dim)
    var = jnp.maximum(s2 * (1.0 / dim) - mu * mu, 0.0)
    return (x - mu) * jax.lax.rsqrt(var + LN_EPS) * gamma + beta


def fcnn_kernel(x_ref, w_ref, v_ref, o_ref):
    x = x_ref[...]                                     # [TB, 32] f32 (unpadded)
    tb = x.shape[0]
    # widen to 128 lanes with TRUE zeros before the first skip add
    x128 = jnp.concatenate([x, jnp.zeros((tb, D - IN_DIM), x.dtype)], axis=-1)

    V = v_ref[...]                                     # [16, 128] f32 slab
    b0  = V[_B0:_B0 + 1]
    g1  = V[_G1:_G1 + 1]
    be1 = V[_BE1:_BE1 + 1]
    b1  = V[_B1:_B1 + 1]
    g2  = V[_G2:_G2 + 1]
    be2 = V[_BE2:_BE2 + 1]
    b2  = V[_B2:_B2 + 1]
    g3  = V[_G3:_G3 + 1]
    be3 = V[_BE3:_BE3 + 1]
    b3  = V[_B3:_B3 + 1]

    def mxu(a, layer):
        # bf16 operands on the MXU, f32 accumulation; weight slab is already bf16
        return jnp.dot(a.astype(jnp.bfloat16), w_ref[layer],
                       preferred_element_type=jnp.float32)

    # --- SkipLayer(32, silu, norm=False): silu(Linear(Identity(x))) + x
    h = _silu(mxu(x128, 0) + b0) + x128
    # --- SkipLayer(32, silu, norm=True):  silu(Linear(LayerNorm(h))) + h
    n = _layernorm(h, g1, be1, H0)
    h = _silu(mxu(n, 1) + b1) + h
    # --- LayerNorm(32), Linear(32->64), SiLU
    n = _layernorm(h, g2, be2, H1)
    h = _silu(mxu(n, 2) + b2)
    # --- LayerNorm(64), Linear(64->16): emit at the real output width
    n = _layernorm(h, g3, be3, H2)
    y = mxu(n, 3) + b3                                 # [TB, 128], lanes >= 16 are zero
    o_ref[...] = y[:, :OUT_DIM].astype(o_ref.dtype)    # [TB, 16] store


def _largest_div8(B, cap):
    best = None
    for cand in range(8, cap + 1, 8):
        if B % cand == 0:
            best = cand
    return best


def _pick_tile(B, cap=1024):
    # 8-row sublane granularity required; no tail handling (document, don't pad).
    assert B % 8 == 0, "batch must be a multiple of 8 rows"
    tb = _largest_div8(B, min(B, cap))
    # v7x megacore: prefer >= 2 grid steps so ("parallel",) uses both TensorCores
    if B // tb < 2:
        half = _largest_div8(B, max(B // 2, 8))
        if half is not None and B // half >= 2:
            tb = half
    return tb


def fcnn_pallas(x, w_slab, v_slab):
    B, in_dim = x.shape
    assert in_dim == IN_DIM
    TB = _pick_tile(B)

    return pl.pallas_call(
        fcnn_kernel,
        out_shape=jax.ShapeDtypeStruct((B, OUT_DIM), jnp.float32),
        grid=(B // TB,),
        in_specs=[
            # activations: unpadded [B,32], minor block dim == full array dim
            pl.BlockSpec((TB, IN_DIM), lambda i: (i, 0)),
            # parameter slabs: whole-array VMEM residents (single copy, no
            # redundant pipeline double-buffer)
            pl.BlockSpec(memory_space=pltpu.MemorySpace.VMEM),
            pl.BlockSpec(memory_space=pltpu.MemorySpace.VMEM),
        ],
        # output at its final shape: no wrapper-side slice / extra HBM pass
        out_specs=pl.BlockSpec((TB, OUT_DIM), lambda i: (i, 0)),
        compiler_params=pltpu.CompilerParams(
            dimension_semantics=("parallel",),
            vmem_limit_bytes=32 * 1024 * 1024,
        ),
    )(x, w_slab, v_slab)


def init_params(key):
    """Deterministic init mimicking torch.nn.Linear (U[-1/sqrt(fan_in), ...]) and
    torch.nn.LayerNorm (gamma=1, beta=0). Returns unpacked f32 params."""
    ks = jax.random.split(key, 4)

    def linear(k, fan_in, fan_out):
        kw, kb = jax.random.split(k)
        bound = 1.0 / jnp.sqrt(fan_in)
        w = jax.random.uniform(kw, (fan_in, fan_out), jnp.float32, -bound, bound)  # [in,out]
        b = jax.random.uniform(kb, (fan_out,), jnp.float32, -bound, bound)
        return w, b

    def ln(dim):
        return jnp.ones((dim,), jnp.float32), jnp.zeros((dim,), jnp.float32)

    w0, b0 = linear(ks[0], IN_DIM, H0)
    g1, be1 = ln(H0)
    w1, b1 = linear(ks[1], H0, H1)
    g2, be2 = ln(H1)
    w2, b2 = linear(ks[2], H1, H2)
    g3, be3 = ln(H2)
    w3, b3 = linear(ks[3], H2, OUT_DIM)
    return dict(w0=w0, b0=b0, g1=g1, be1=be1, w1=w1, b1=b1,
                g2=g2, be2=be2, w2=w2, b2=b2, g3=g3, be3=be3, w3=w3, b3=b3)


def pack_params(raw):
    """Pack the 14 parameter tensors into one bf16 weight slab [4,128,128] and one
    f32 vector slab [16,128], zero-padded so all in-kernel math is lane-dense."""
    w_slab = jnp.zeros((4, D, D), jnp.float32)
    w_slab = w_slab.at[0, :IN_DIM, :H0].set(raw["w0"])
    w_slab = w_slab.at[1, :H0, :H1].set(raw["w1"])
    w_slab = w_slab.at[2, :H1, :H2].set(raw["w2"])
    w_slab = w_slab.at[3, :H2, :OUT_DIM].set(raw["w3"])
    w_slab = w_slab.astype(jnp.bfloat16)

    v_slab = jnp.zeros((VEC_ROWS, D), jnp.float32)
    rows = [("b0", _B0, H0), ("g1", _G1, H0), ("be1", _BE1, H0), ("b1", _B1, H1),
            ("g2", _G2, H1), ("be2", _BE2, H1), ("b2", _B2, H2),
            ("g3", _G3, H2), ("be3", _BE3, H2), ("b3", _B3, OUT_DIM)]
    for name, row, dim in rows:
        v_slab = v_slab.at[row, :dim].set(raw[name])
    return w_slab, v_slab


def fcnn_ref(x, raw):
    """Pure-JAX f32 reference of the torch forward pass (two-pass LN, exact sigmoid)."""
    def silu(v):
        return v * jax.nn.sigmoid(v)

    def lnorm(v, g, b):
        mu = jnp.mean(v, axis=-1, keepdims=True)
        var = jnp.mean((v - mu) ** 2, axis=-1, keepdims=True)
        return (v - mu) * jax.lax.rsqrt(var + LN_EPS) * g + b

    h = silu(x @ raw["w0"] + raw["b0"]) + x                 # SkipLayer, norm=False
    n = lnorm(h, raw["g1"], raw["be1"])
    h = silu(n @ raw["w1"] + raw["b1"]) + h                 # SkipLayer, norm=True
    n = lnorm(h, raw["g2"], raw["be2"])
    h = silu(n @ raw["w2"] + raw["b2"])
    n = lnorm(h, raw["g3"], raw["be3"])
    return n @ raw["w3"] + raw["b3"]


if __name__ == "__main__":
    key = jax.random.PRNGKey(0)
    kx, kp = jax.random.split(key)
    x = jax.random.normal(kx, (BATCH, IN_DIM), jnp.float32)

    raw = init_params(kp)
    w_slab, v_slab = pack_params(raw)

    out = jax.block_until_ready(fcnn_pallas(x, w_slab, v_slab))

    ref = fcnn_ref(x, raw)
    assert out.shape == (BATCH, OUT_DIM)
    # bf16 MXU operands + approx-reciprocal sigmoid + one-pass LN vs f32 reference
    assert jnp.allclose(out, ref, atol=5e-2, rtol=5e-2), "mismatch vs pure-JAX reference"

    print("KERNEL_OK")
</pallas_src>

<mosaic_0001>
module attributes {stable_mosaic.version = 11 : i64} {
  func.func @fcnn_kernel(%arg0: i32, %arg1: memref<8x32xf32, #tpu.memory_space<vmem>>, %arg2: memref<4x128x128xbf16, #tpu.memory_space<vmem>>, %arg3: memref<16x128xf32, #tpu.memory_space<vmem>>, %arg4: memref<8x16xf32, #tpu.memory_space<vmem>>) attributes {dimension_semantics = [#tpu.dimension_semantics<parallel>], iteration_bounds = array<i64: 2>, scalar_prefetch = 0 : i64, scratch_operands = 0 : i64, tpu.core_type = #tpu.core_type<tc>, window_params = [{transform_indices = @transform_0, window_bounds = array<i64: 8, 32>}, {pipeline_mode = #tpu.pipeline_mode<synchronous>, transform_indices = @transform_1, window_bounds = array<i64: 4, 128, 128>}, {pipeline_mode = #tpu.pipeline_mode<synchronous>, transform_indices = @transform_2, window_bounds = array<i64: 16, 128>}, {transform_indices = @transform_3, window_bounds = array<i64: 8, 16>}]} {
    %c0 = arith.constant 0 : index
    %c0_0 = arith.constant 0 : index
    %0 = vector.load %arg1[%c0, %c0_0] : memref<8x32xf32, #tpu.memory_space<vmem>>, vector<8x32xf32>
    %cst = arith.constant 0.000000e+00 : f32
    %1 = vector.broadcast %cst : f32 to vector<8x96xf32>
    %2 = tpu.concatenate %0, %1 in 1 : vector<8x32xf32>, vector<8x96xf32> -> vector<8x128xf32>
    %c0_1 = arith.constant 0 : index
    %c0_2 = arith.constant 0 : index
    %3 = vector.load %arg3[%c0_1, %c0_2] : memref<16x128xf32, #tpu.memory_space<vmem>>, vector<16x128xf32>
    %4 = vector.extract_strided_slice %3 {offsets = [0, 0], sizes = [1, 128], strides = [1, 1]} : vector<16x128xf32> to vector<1x128xf32>
    %5 = vector.extract_strided_slice %3 {offsets = [1, 0], sizes = [1, 128], strides = [1, 1]} : vector<16x128xf32> to vector<1x128xf32>
    %6 = vector.extract_strided_slice %3 {offsets = [2, 0], sizes = [1, 128], strides = [1, 1]} : vector<16x128xf32> to vector<1x128xf32>
    %7 = vector.extract_strided_slice %3 {offsets = [3, 0], sizes = [1, 128], strides = [1, 1]} : vector<16x128xf32> to vector<1x128xf32>
    %8 = vector.extract_strided_slice %3 {offsets = [4, 0], sizes = [1, 128], strides = [1, 1]} : vector<16x128xf32> to vector<1x128xf32>
    %9 = vector.extract_strided_slice %3 {offsets = [5, 0], sizes = [1, 128], strides = [1, 1]} : vector<16x128xf32> to vector<1x128xf32>
    %10 = vector.extract_strided_slice %3 {offsets = [6, 0], sizes = [1, 128], strides = [1, 1]} : vector<16x128xf32> to vector<1x128xf32>
    %11 = vector.extract_strided_slice %3 {offsets = [7, 0], sizes = [1, 128], strides = [1, 1]} : vector<16x128xf32> to vector<1x128xf32>
    %12 = vector.extract_strided_slice %3 {offsets = [8, 0], sizes = [1, 128], strides = [1, 1]} : vector<16x128xf32> to vector<1x128xf32>
    %13 = vector.extract_strided_slice %3 {offsets = [9, 0], sizes = [1, 128], strides = [1, 1]} : vector<16x128xf32> to vector<1x128xf32>
    %14 = arith.truncf %2 : vector<8x128xf32> to vector<8x128xbf16>
    %c0_3 = arith.constant 0 : index
    %c0_4 = arith.constant 0 : index
    %c0_5 = arith.constant 0 : index
    %15 = vector.load %arg2[%c0_3, %c0_4, %c0_5] : memref<4x128x128xbf16, #tpu.memory_space<vmem>>, vector<1x128x128xbf16>
    %16 = vector.shape_cast %15 : vector<1x128x128xbf16> to vector<128x128xbf16>
    %cst_6 = arith.constant dense<0.000000e+00> : vector<8x128xf32>
    %17 = tpu.matmul %14, %16, %cst_6 {dimension_numbers = #tpu.dot_dimension_numbers<[1], [0], [0], [1], [0, 0, 1, 1], [], []>} : vector<8x128xbf16>, vector<128x128xbf16>, vector<8x128xf32> -> vector<8x128xf32>
    %18 = vector.broadcast %4 : vector<1x128xf32> to vector<8x128xf32>
    %19 = arith.addf %17, %18 : vector<8x128xf32>
    %cst_7 = arith.constant 0.000000e+00 : f32
    %20 = vector.broadcast %cst_7 : f32 to vector<8x128xf32>
    %21 = arith.subf %20, %19 : vector<8x128xf32>
    %22 = math.exp %21 : vector<8x128xf32>
    %cst_8 = arith.constant 1.000000e+00 : f32
    %23 = vector.broadcast %cst_8 : f32 to vector<8x128xf32>
    %24 = arith.addf %23, %22 : vector<8x128xf32>
    %25 = tpu.reciprocal %24 {approx = true} : vector<8x128xf32> -> vector<8x128xf32>
    %26 = arith.mulf %19, %25 : vector<8x128xf32>
    %27 = arith.addf %26, %2 : vector<8x128xf32>
    %cst_9 = arith.constant dense<0.000000e+00> : vector<8xf32>
    %28 = vector.multi_reduction <add>, %27, %cst_9 [1] : vector<8x128xf32> to vector<8xf32>
    %29 = vector.shape_cast %28 : vector<8xf32> to vector<8x1xf32>
    %30 = arith.mulf %27, %27 : vector<8x128xf32>
    %cst_10 = arith.constant dense<0.000000e+00> : vector<8xf32>
    %31 = vector.multi_reduction <add>, %30, %cst_10 [1] : vector<8x128xf32> to vector<8xf32>
    %32 = vector.shape_cast %31 : vector<8xf32> to vector<8x1xf32>
    %cst_11 = arith.constant 3.125000e-02 : f32
    %33 = vector.broadcast %cst_11 : f32 to vector<8x1xf32>
    %34 = arith.mulf %29, %33 : vector<8x1xf32>
    %cst_12 = arith.constant 3.125000e-02 : f32
    %35 = vector.broadcast %cst_12 : f32 to vector<8x1xf32>
    %36 = arith.mulf %32, %35 : vector<8x1xf32>
    %37 = arith.mulf %34, %34 : vector<8x1xf32>
    %38 = arith.subf %36, %37 : vector<8x1xf32>
    %cst_13 = arith.constant 0.000000e+00 : f32
    %39 = vector.broadcast %cst_13 : f32 to vector<8x1xf32>
    %40 = arith.maximumf %38, %39 : vector<8x1xf32>
    %41 = vector.broadcast %34 : vector<8x1xf32> to vector<8x128xf32>
    %42 = arith.subf %27, %41 : vector<8x128xf32>
    %cst_14 = arith.constant 9.99999974E-6 : f32
    %43 = vector.broadcast %cst_14 : f32 to vector<8x1xf32>
    %44 = arith.addf %40, %43 : vector<8x1xf32>
    %45 = math.rsqrt %44 : vector<8x1xf32>
    %46 = vector.broadcast %45 : vector<8x1xf32> to vector<8x128xf32>
    %47 = arith.mulf %42, %46 : vector<8x128xf32>
    %48 = vector.broadcast %5 : vector<1x128xf32> to vector<8x128xf32>
    %49 = arith.mulf %47, %48 : vector<8x128xf32>
    %50 = vector.broadcast %6 : vector<1x128xf32> to vector<8x128xf32>
    %51 = arith.addf %49, %50 : vector<8x128xf32>
    %52 = arith.truncf %51 : vector<8x128xf32> to vector<8x128xbf16>
    %c1 = arith.constant 1 : index
    %c0_15 = arith.constant 0 : index
    %c0_16 = arith.constant 0 : index
    %53 = vector.load %arg2[%c1, %c0_15, %c0_16] : memref<4x128x128xbf16, #tpu.memory_space<vmem>>, vector<1x128x128xbf16>
    %54 = vector.shape_cast %53 : vector<1x128x128xbf16> to vector<128x128xbf16>
    %cst_17 = arith.constant dense<0.000000e+00> : vector<8x128xf32>
    %55 = tpu.matmul %52, %54, %cst_17 {dimension_numbers = #tpu.dot_dimension_numbers<[1], [0], [0], [1], [0, 0, 1, 1], [], []>} : vector<8x128xbf16>, vector<128x128xbf16>, vector<8x128xf32> -> vector<8x128xf32>
    %56 = vector.broadcast %7 : vector<1x128xf32> to vector<8x128xf32>
    %57 = arith.addf %55, %56 : vector<8x128xf32>
    %cst_18 = arith.constant 0.000000e+00 : f32
    %58 = vector.broadcast %cst_18 : f32 to vector<8x128xf32>
    %59 = arith.subf %58, %57 : vector<8x128xf32>
    %60 = math.exp %59 : vector<8x128xf32>
    %cst_19 = arith.constant 1.000000e+00 : f32
    %61 = vector.broadcast %cst_19 : f32 to vector<8x128xf32>
    %62 = arith.addf %61, %60 : vector<8x128xf32>
    %63 = tpu.reciprocal %62 {approx = true} : vector<8x128xf32> -> vector<8x128xf32>
    %64 = arith.mulf %57, %63 : vector<8x128xf32>
    %65 = arith.addf %64, %27 : vector<8x128xf32>
    %cst_20 = arith.constant dense<0.000000e+00> : vector<8xf32>
    %66 = vector.multi_reduction <add>, %65, %cst_20 [1] : vector<8x128xf32> to vector<8xf32>
    %67 = vector.shape_cast %66 : vector<8xf32> to vector<8x1xf32>
    %68 = arith.mulf %65, %65 : vector<8x128xf32>
    %cst_21 = arith.constant dense<0.000000e+00> : vector<8xf32>
    %69 = vector.multi_reduction <add>, %68, %cst_21 [1] : vector<8x128xf32> to vector<8xf32>
    %70 = vector.shape_cast %69 : vector<8xf32> to vector<8x1xf32>
    %cst_22 = arith.constant 3.125000e-02 : f32
    %71 = vector.broadcast %cst_22 : f32 to vector<8x1xf32>
    %72 = arith.mulf %67, %71 : vector<8x1xf32>
    %cst_23 = arith.constant 3.125000e-02 : f32
    %73 = vector.broadcast %cst_23 : f32 to vector<8x1xf32>
    %74 = arith.mulf %70, %73 : vector<8x1xf32>
    %75 = arith.mulf %72, %72 : vector<8x1xf32>
    %76 = arith.subf %74, %75 : vector<8x1xf32>
    %cst_24 = arith.constant 0.000000e+00 : f32
    %77 = vector.broadcast %cst_24 : f32 to vector<8x1xf32>
    %78 = arith.maximumf %76, %77 : vector<8x1xf32>
    %79 = vector.broadcast %72 : vector<8x1xf32> to vector<8x128xf32>
    %80 = arith.subf %65, %79 : vector<8x128xf32>
    %cst_25 = arith.constant 9.99999974E-6 : f32
    %81 = vector.broadcast %cst_25 : f32 to vector<8x1xf32>
    %82 = arith.addf %78, %81 : vector<8x1xf32>
    %83 = math.rsqrt %82 : vector<8x1xf32>
    %84 = vector.broadcast %83 : vector<8x1xf32> to vector<8x128xf32>
    %85 = arith.mulf %80, %84 : vector<8x128xf32>
    %86 = vector.broadcast %8 : vector<1x128xf32> to vector<8x128xf32>
    %87 = arith.mulf %85, %86 : vector<8x128xf32>
    %88 = vector.broadcast %9 : vector<1x128xf32> to vector<8x128xf32>
    %89 = arith.addf %87, %88 : vector<8x128xf32>
    %90 = arith.truncf %89 : vector<8x128xf32> to vector<8x128xbf16>
    %c2 = arith.constant 2 : index
    %c0_26 = arith.constant 0 : index
    %c0_27 = arith.constant 0 : index
    %91 = vector.load %arg2[%c2, %c0_26, %c0_27] : memref<4x128x128xbf16, #tpu.memory_space<vmem>>, vector<1x128x128xbf16>
    %92 = vector.shape_cast %91 : vector<1x128x128xbf16> to vector<128x128xbf16>
    %cst_28 = arith.constant dense<0.000000e+00> : vector<8x128xf32>
    %93 = tpu.matmul %90, %92, %cst_28 {dimension_numbers = #tpu.dot_dimension_numbers<[1], [0], [0], [1], [0, 0, 1, 1], [], []>} : vector<8x128xbf16>, vector<128x128xbf16>, vector<8x128xf32> -> vector<8x128xf32>
    %94 = vector.broadcast %10 : vector<1x128xf32> to vector<8x128xf32>
    %95 = arith.addf %93, %94 : vector<8x128xf32>
    %cst_29 = arith.constant 0.000000e+00 : f32
    %96 = vector.broadcast %cst_29 : f32 to vector<8x128xf32>
    %97 = arith.subf %96, %95 : vector<8x128xf32>
    %98 = math.exp %97 : vector<8x128xf32>
    %cst_30 = arith.constant 1.000000e+00 : f32
    %99 = vector.broadcast %cst_30 : f32 to vector<8x128xf32>
    %100 = arith.addf %99, %98 : vector<8x128xf32>
    %101 = tpu.reciprocal %100 {approx = true} : vector<8x128xf32> -> vector<8x128xf32>
    %102 = arith.mulf %95, %101 : vector<8x128xf32>
    %cst_31 = arith.constant dense<0.000000e+00> : vector<8xf32>
    %103 = vector.multi_reduction <add>, %102, %cst_31 [1] : vector<8x128xf32> to vector<8xf32>
    %104 = vector.shape_cast %103 : vector<8xf32> to vector<8x1xf32>
    %105 = arith.mulf %102, %102 : vector<8x128xf32>
    %cst_32 = arith.constant dense<0.000000e+00> : vector<8xf32>
    %106 = vector.multi_reduction <add>, %105, %cst_32 [1] : vector<8x128xf32> to vector<8xf32>
    %107 = vector.shape_cast %106 : vector<8xf32> to vector<8x1xf32>
    %cst_33 = arith.constant 1.562500e-02 : f32
    %108 = vector.broadcast %cst_33 : f32 to vector<8x1xf32>
    %109 = arith.mulf %104, %108 : vector<8x1xf32>
    %cst_34 = arith.constant 1.562500e-02 : f32
    %110 = vector.broadcast %cst_34 : f32 to vector<8x1xf32>
    %111 = arith.mulf %107, %110 : vector<8x1xf32>
    %112 = arith.mulf %109, %109 : vector<8x1xf32>
    %113 = arith.subf %111, %112 : vector<8x1xf32>
    %cst_35 = arith.constant 0.000000e+00 : f32
    %114 = vector.broadcast %cst_35 : f32 to vector<8x1xf32>
    %115 = arith.maximumf %113, %114 : vector<8x1xf32>
    %116 = vector.broadcast %109 : vector<8x1xf32> to vector<8x128xf32>
    %117 = arith.subf %102, %116 : vector<8x128xf32>
    %cst_36 = arith.constant 9.99999974E-6 : f32
    %118 = vector.broadcast %cst_36 : f32 to vector<8x1xf32>
    %119 = arith.addf %115, %118 : vector<8x1xf32>
    %120 = math.rsqrt %119 : vector<8x1xf32>
    %121 = vector.broadcast %120 : vector<8x1xf32> to vector<8x128xf32>
    %122 = arith.mulf %117, %121 : vector<8x128xf32>
    %123 = vector.broadcast %11 : vector<1x128xf32> to vector<8x128xf32>
    %124 = arith.mulf %122, %123 : vector<8x128xf32>
    %125 = vector.broadcast %12 : vector<1x128xf32> to vector<8x128xf32>
    %126 = arith.addf %124, %125 : vector<8x128xf32>
    %127 = arith.truncf %126 : vector<8x128xf32> to vector<8x128xbf16>
    %c3 = arith.constant 3 : index
    %c0_37 = arith.constant 0 : index
    %c0_38 = arith.constant 0 : index
    %128 = vector.load %arg2[%c3, %c0_37, %c0_38] : memref<4x128x128xbf16, #tpu.memory_space<vmem>>, vector<1x128x128xbf16>
    %129 = vector.shape_cast %128 : vector<1x128x128xbf16> to vector<128x128xbf16>
    %cst_39 = arith.constant dense<0.000000e+00> : vector<8x128xf32>
    %130 = tpu.matmul %127, %129, %cst_39 {dimension_numbers = #tpu.dot_dimension_numbers<[1], [0], [0], [1], [0, 0, 1, 1], [], []>} : vector<8x128xbf16>, vector<128x128xbf16>, vector<8x128xf32> -> vector<8x128xf32>
    %131 = vector.broadcast %13 : vector<1x128xf32> to vector<8x128xf32>
    %132 = arith.addf %130, %131 : vector<8x128xf32>
    %133 = vector.extract_strided_slice %132 {offsets = [0, 0], sizes = [8, 16], strides = [1, 1]} : vector<8x128xf32> to vector<8x16xf32>
    %c0_40 = arith.constant 0 : index
    %c0_41 = arith.constant 0 : index
    %134 = vector.load %arg4[%c0_40, %c0_41] : memref<8x16xf32, #tpu.memory_space<vmem>>, vector<8x16xf32>
    tpu.vector_store %arg4[%c0_40, %c0_41], %133 {strides = array<i32>} : memref<8x16xf32, #tpu.memory_space<vmem>>, vector<8x16xf32>,
    return
  }
  func.func @transform_0(%arg0: i32) -> (i32, i32) {
    %c0_i32 = arith.constant 0 : i32
    %c0_i32_0 = arith.constant 0 : i32
    return %arg0, %c0_i32 : i32, i32
  }
  func.func @transform_1(%arg0: i32) -> (i32, i32, i32) {
    %c0_i32 = arith.constant 0 : i32
    %c0_i32_0 = arith.constant 0 : i32
    %c0_i32_1 = arith.constant 0 : i32
    %c0_i32_2 = arith.constant 0 : i32
    return %c0_i32, %c0_i32_0, %c0_i32_1 : i32, i32, i32
  }
  func.func @transform_2(%arg0: i32) -> (i32, i32) {
    %c0_i32 = arith.constant 0 : i32
    %c0_i32_0 = arith.constant 0 : i32
    %c0_i32_1 = arith.constant 0 : i32
    return %c0_i32, %c0_i32_0 : i32, i32
  }
  func.func @transform_3(%arg0: i32) -> (i32, i32) {
    %c0_i32 = arith.constant 0 : i32
    %c0_i32_0 = arith.constant 0 : i32
    return %arg0, %c0_i32 : i32, i32
  }
}

</mosaic_0001>

<bundles_post_ra>
// kernel: tpu_custom_call.1
= control target key start
LH: loop header
LB: loop body
LE: loop exit
PB: predicated region body
PF: predicated region fallthrough
CT: control target
= control target key end

     0   :  { %8 = vsyncpa [#allocation3], 0  ;;  %s1646_s0 = inlined_call_operand.hbm [shape: f32[16,32], index: 0, kind: input, shape index: {}]   ;;  %s1647_s1 = inlined_call_operand.hbm [shape: bf16[4,128,128], index: 1, kind: input, shape index: {}]   ;;  %s1648_s2 = inlined_call_operand.hbm [shape: f32[16,128], index: 2, kind: input, shape index: {}]   ;;  %s1649_s3 = inlined_call_operand.hbm [shape: f32[16,16], index: 3, kind: output, shape index: {}]  }
   0x1   :  { %10 = vsyncpa [#allocation3 + $0x1], 0 }
   0x2   :  { %11 = vsyncpa [#allocation6], 0 }
   0x3   :  { %12 = vsyncpa [#allocation4], 0 }
   0x4   :  { %14 = vsyncpa [#allocation4 + $0x1], 0  ;;  %s1335_s12 = smov 0   ;;  %s1337_s13 = smov 0  }
   0x5   :  { %s1339_s14 = smov 0   ;;  %s1341_s15 = smov 0  }
   0x6 LB: > { %s1356_s16 = sadd.s32 4294967295, %s1303_s15   ;;  %s857_s17 = sadd.s32 4294967294, %s1303_s15   ;;  %s1303_s15 = sphi %s1341_s15, %s1669_s15   ;;  %s1299_s14 = sphi %s1339_s14, %s1668_s14   ;;  %s1295_s13 = sphi %s1337_s13, %s1667_s13   ;;  %s1291_s12 = sphi %s1335_s12, %s1666_s12  }
   0x7   : > { %p40_p0 = scmp.ne.s32.totalorder %s1295_s13, %s1291_s12  ;;  %p1650_p1 = scmp.eq.s32.totalorder %s1356_s16, 0 }
   0x8   : > { %p112_p3 = scmp.eq.s32.totalorder %s857_s17, 1  ;;  %p858_p5 = scmp.ge.s32.totalorder %s1303_s15, 1 }
   0x9   : > { %p1365_p4 = por %p1650_p1, %p40_p0  ;;  %p119_p7 = scmp.lt.s32.totalorder %s1303_s15, 3 }
   0xa   : > { %p1370_p6 = por %p112_p3, %p40_p0  ;;  %s1305_s21 = smov [#allocation5]  }
   0xb   : > { %s1653_s18 = scalar_select %p1365_p4, 1, 0 }
   0xc   : > { %s1654_s19 = scalar_select %p1370_p6, 1, 0 }
   0xd   : > { %p1375_p8 = pnand %p858_p5, %p119_p7  ;;  %s131_s22 = sshll.u32 %s1305_s21, 4  ;;  %s1379_s22 = int_to_ptr.vmem [resolvable:$true] %s131_s22 }
   0xe   : > { %s1306_s24 = smov [#allocation7]   ;;  %s1147_s28 = scalar_lea.hbm %s1647_s1, 4096 }
   0xf   : > { %p1036_p9 = pneg %p1375_p8  ;;  %s144_s25 = sshll.u32 %s1306_s24, 4  ;;  %s1390_s25 = int_to_ptr.vmem [resolvable:$true] %s144_s25 }
  0x10   : > { %p1148_p12 = scmp.ne.s32.totalorder %s1647_s1, %s1147_s28  ;;  %p1154_p5 = scmp.lt.u32.totalorder %s1147_s28, %s1647_s1 }
  0x11   : > { %p1386_p11 = pnand %p1036_p9, %p1650_p1 }
  0x13   : > { %p1149_p13 = pneg %p1386_p11 }
  0x15   : > { %p1150_p0 = pnand %p1149_p13, %p1148_p12 }
  0x17   : > { %p1151_p3 = pneg %p1150_p0 }
  0x19   : > { %p1156_p7 = pnand %p1154_p5, %p1151_p3 }
  0x1b   : > { %1159 = shalt.err (!%p1156_p7)
}
  0x1c   : > { %s1160_s6 = scalar_lea.vmem %s1379_s22, 4096  ;;  %p1168_p2 = scmp.lt.s32.totalorder %s1379_s22, %s1379_s22 }
  0x1d   : > { %p1161_p9 = scmp.ne.s32.totalorder %s1379_s22, %s1160_s6  ;;  %p1169_p12 = scmp.lt.s32.totalorder %s1160_s6, %s1160_s6 }
  0x1f   : > { %p1163_p10 = pnand %p1161_p9, %p1149_p13  ;;  %p1170_p0 = por %p1169_p12, %p1168_p2 }
  0x21   : > { %p1164_p1 = pneg %p1163_p10 }
  0x23   : > { %p1171_p6 = pnand %p1170_p0, %p1164_p1 }
  0x25   : > { %1174 = shalt.err (!%p1171_p6)
}
  0x26   : > { %s1307_s7 = smov 64   ;;  %s1308_s8 = smov 4  }
  0x27   : > { %1039 = dma.hbm_to_vmem [thread:$0]  (!%p1386_p11), %s1647_s1, 4096, %s1379_s22, [#allocation6], %s1307_s7, %s1307_s7, %s1308_s8  }
  0x28   : > { %s1175_s21 = scalar_lea.hbm %s1648_s2, 256 }
  0x29   : > { %p1176_p2 = scmp.ne.s32.totalorder %s1648_s2, %s1175_s21  ;;  %p1182_p10 = scmp.lt.u32.totalorder %s1175_s21, %s1648_s2 }
  0x2b   : > { %p1178_p1 = pnand %p1176_p2, %p1149_p13 }
  0x2d   : > { %p1179_p6 = pneg %p1178_p1 }
  0x2f   : > { %p1184_p3 = pnand %p1182_p10, %p1179_p6 }
  0x31   : > { %1187 = shalt.err (!%p1184_p3)
}
  0x32   : > { %s1188_s22 = scalar_lea.vmem %s1390_s25, 256  ;;  %p1196_p12 = scmp.lt.s32.totalorder %s1390_s25, %s1390_s25 }
  0x33   : > { %p1189_p5 = scmp.ne.s32.totalorder %s1390_s25, %s1188_s22  ;;  %p1197_p0 = scmp.lt.s32.totalorder %s1188_s22, %s1188_s22 }
  0x35   : > { %p1191_p7 = pnand %p1189_p5, %p1149_p13  ;;  %p1198_p2 = por %p1197_p0, %p1196_p12 }
  0x37   : > { %p1192_p9 = pneg %p1191_p7 }
  0x39   : > { %p1199_p1 = pnand %p1198_p2, %p1192_p9 }
  0x3b   : > { %1202 = shalt.err (!%p1199_p1)
}
  0x3c   : > { %s1309_s29 = smov 128   ;;  %s1310_s30 = smov 8  }
  0x3d   : > { %1042 = dma.hbm_to_vmem [thread:$0]  (!%p1386_p11), %s1648_s2, 256, %s1390_s25, [#allocation6], %s1309_s29, %s1309_s29, %s1310_s30  }
  0x3e   : > { %s1445_s6 = sadd.s32 1, %s1303_s15   ;;  %s27_s8 = sadd.s32 1, %s1299_s14 }
  0x3f   : > { %s24_s7 = ssub.s32 %s1303_s15, %s1445_s6  ;;  %p34_p6 = scmp.ne.s32.totalorder %s1299_s14, %s1295_s13 }
  0x40   : > { %p25_p13 = scmp.eq.s32.totalorder %s24_s7, 0  ;;  %p35_p10 = scmp.eq.s32.totalorder %s1303_s15, 0 }
  0x41   : > { %p1657_p5 = scmp.eq.s32.totalorder %s1356_s16, 1  ;;  %p1053_p9 = scmp.lt.s32.totalorder %s1303_s15, 2 }
  0x42   : > { %s1454_s9 = scalar_select %p25_p13, %s1299_s14, %s27_s8  }
  0x43   : > { %p36_p3 = por %p35_p10, %p34_p6  ;;  %p1458_p7 = por %p1657_p5, %p34_p6 }
  0x44   : > { %s158_s23 = sand.u32 1, %s1299_s14   ;;  %s863_s25 = sshll.u32 %s1303_s15, 7 }
  0x45   : > { %s1658_s10 = scalar_select %p1458_p7, 1, 0 }
  0x46   : > { %s862_s11 = sshll.u32 %s158_s23, 3  ;;  %s1468_s24 = scalar_lea.hbm %s1646_s0, %s863_s25 }
  0x47   : > { %s162_s26 = scalar_lea.vmem [#allocation2], %s862_s11  ;;  %p1472_p11 = pnand %p1053_p9, %p36_p3 }
  0x48   : > { %s169_s27 = sshll.u32 %s162_s26, 4  ;;  %s159_s22 = scalar_lea.sflag [#allocation3], %s158_s23  ;;  %s1470_s27 = int_to_ptr.vmem [resolvable:$true] %s169_s27 }
  0x49   : > { %s1203_s29 = scalar_lea.hbm %s1468_s24, 128  ;;  %p1205_p0 = pneg %p1472_p11 }
  0x4a   : > { %p1204_p12 = scmp.ne.s32.totalorder %s1468_s24, %s1203_s29  ;;  %s1208_s5 = scalar_lea.hbm %s1646_s0, 256 }
  0x4b   : > { %p1209_p13 = scmp.lt.u32.totalorder %s1468_s24, %s1646_s0  ;;  %p1210_p6 = scmp.lt.u32.totalorder %s1208_s5, %s1203_s29 }
  0x4c   : > { %p1206_p2 = pnand %p1205_p0, %p1204_p12  ;;  %p1212_p3 = scmp.lt.u32.totalorder %s1203_s29, %s1468_s24 }
  0x4d   : > { %p1211_p10 = por %p1210_p6, %p1209_p13 }
  0x4e   : > { %p1207_p1 = pneg %p1206_p2 }
  0x4f   : > { %p1213_p5 = por %p1212_p3, %p1211_p10 }
  0x51   : > { %p1214_p9 = pnand %p1213_p5, %p1207_p1 }
  0x53   : > { %1217 = shalt.err (!%p1214_p9)
}
  0x54   : > { %s1218_s23 = scalar_lea.vmem %s1470_s27, 128  ;;  %s1311_s11 = smov [#allocation2]  }
  0x55   : > { %p1219_p12 = scmp.ne.s32.totalorder %s1470_s27, %s1218_s23  ;;  %s1223_s25 = sshll.u32 %s1311_s11, 4  ;;  %s1224_s25 = int_to_ptr.vmem [resolvable:$false] %s1223_s25 }
  0x56   : > { %s1225_s17 = scalar_lea.vmem %s1224_s25, 256  ;;  %p1226_p4 = scmp.lt.s32.totalorder %s1470_s27, %s1224_s25 }
  0x57   : > { %p1221_p2 = pnand %p1219_p12, %p1205_p0  ;;  %p1227_p13 = scmp.lt.s32.totalorder %s1225_s17, %s1218_s23 }
  0x59   : > { %p1222_p7 = pneg %p1221_p2  ;;  %p1228_p6 = por %p1227_p13, %p1226_p4 }
  0x5b   : > { %p1229_p10 = pnand %p1228_p6, %p1222_p7 }
  0x5d   : > { %1232 = shalt.err (!%p1229_p10)
}
  0x5e   : > { %1046 = dma.hbm_to_vmem [thread:$0]  (!%p1472_p11), %s1468_s24, 128, %s1470_s27, %s159_s22  }
  0x5f   : > { %178 = sbr.rel (%p1375_p8) target bundleno = 1621 (0x655), region = 32  ;;  %s1504_s21 = sand.u32 (!%p1375_p8), 1, %s1295_s13  }
  0x60   : > { %s865_s26 = sshll.u32 (!%p1375_p8), %s1504_s21, 3  ;;  %s181_s29 = scalar_lea.sflag (!%p1375_p8), [#allocation3], %s1504_s21 }
  0x61   : > { %s184_s30 = scalar_lea.vmem (!%p1375_p8), [#allocation2], %s865_s26  ;;  %p1660_p4 = scmp.ne.s32.totalorder (!%p1375_p8), %s1653_s18, 0 }
  0x66   : > { %1278 = dma.done.wait (%p1660_p4), %s181_s29, 128  }
  0x67   : > { %1280 = vsyncadd (%p1660_p4), %s181_s29, 4294967168  ;;  %p1661_p7 = scmp.eq.s32.totalorder %s1356_s16, 0 }
  0x69   : > { %1282 = dma.done.wait (%p1661_p7), [#allocation6], 4352   ;;  %p1662_p8 = pmov %p1661_p7 }
  0x6a   : > { %v1312_v0 = vmov 0.0   ;;  %vm1313_vm0 = vmmov 0   ;;  %v1097_v1 = vld [vmem:[#allocation5] sm:$0xff]   ;;  %v1098_v2 = vld [vmem:[#allocation5 + $0x8] sm:$0xff]   ;;  %v1099_v3 = vld [vmem:[#allocation5 + $0x10] sm:$0xff]   ;;  %vm217_vm1 = vcmask 261120   ;;  %v238_v12 = vlaneseq }
  0x6b   : > { %1284 = vsyncadd (%p1662_p8), [#allocation6], 4294962944  ;;  %944 = vmatprep.subr.bf16.mxu0 %v1312_v0  ;;  %960 = vmatprep.mubr.msk.bf16.mxu0 %vm1313_vm0, %v1312_v0  ;;  %v216_v4 = vld [vmem:[%s184_s30] sm:$0xff]  ;;  %v1101_v7 = vld [vmem:[#allocation5 + $0x20] sm:$0xff]   ;;  %s905_s18 = sshll.u32 %s1356_s16, 7  ;;  %s214_s20 = scalar_lea.vmem [#allocation8], %s865_s26 }
  0x6c   : > { %964 = vmatprep.subr.bf16.mxu1 %v1312_v0  ;;  %980 = vmatprep.mubr.msk.bf16.mxu1 %vm1313_vm0, %v1312_v0  ;;  %v1100_v5 = vld [vmem:[#allocation5 + $0x18] sm:$0xff]   ;;  %v218_v6 = vsel %vm217_vm1, %v216_v4, 0.0  ;;  %v1102_v8 = vld [vmem:[#allocation5 + $0x28] sm:$0xff]   ;;  %v1103_v9 = vld [vmem:[#allocation5 + $0x30] sm:$0xff]   ;;  %v878_v11 = vpack.c.bf16 %v216_v4, %v216_v4  ;;  %v1537_v13 = vshrl.u32 %v238_v12, 7  ;;  %s768_s24 = sshll.u32 %s214_s20, 4  ;;  %s1602_s22 = scalar_lea.hbm %s1649_s3, %s905_s18  ;;  %s1604_s24 = int_to_ptr.vmem [resolvable:$true] %s768_s24 }
  0x6d   : > { %945 = vmatpush3.bf16.msra.mxu0 %v1097_v1  ;;  %v1104_v10 = vld [vmem:[#allocation5 + $0x38] sm:$0xff]   ;;  %vm877_vm2 = vmpackc.low %vm217_vm1, %vm217_vm1  ;;  %v1540_v15 = vld [vmem:[#allocation7] sm:$0xff]  ;;  %vm752_vm3 = vcmask 130048   ;;  %s755_s16 = scalar_lea.sflag [#allocation4], %s1504_s21  ;;  %s1233_s4 = scalar_lea.vmem %s1604_s24, 128 }
  0x6e   : > { %946 = vmatprep.subr.bf16.mxu0 %v1312_v0  ;;  %v240_v14 = vsub.s32 0, %v1537_v13  ;;  %v1105_v30 = vld [vmem:[#allocation5 + $0x40] sm:$0xff]   ;;  %v1106_v31 = vld [vmem:[#allocation5 + $0x48] sm:$0xff]   ;;  %v1107_v32 = vld [vmem:[#allocation5 + $0x50] sm:$0xff]   ;;  %v353_v46 = vsub.s32 1, %v1537_v13  ;;  %v358_v47 = vsub.s32 2, %v1537_v13  ;;  %p1234_p11 = scmp.ne.s32.totalorder %s1604_s24, %s1233_s4 }
  0x6f   : > { %965 = vmatpush3.bf16.msra.mxu1 %v1105_v30  ;;  %v1108_v33 = vld [vmem:[#allocation5 + $0x58] sm:$0xff]   ;;  %v1109_v34 = vld [vmem:[#allocation5 + $0x60] sm:$0xff]   ;;  %v1110_v35 = vld [vmem:[#allocation5 + $0x68] sm:$0xff]   ;;  %v381_v56 = vsub.s32 3, %v1537_v13  ;;  %p1663_p0 = scmp.ne.s32.totalorder %s1658_s10, 0  ;;  %s1314_s5 = smov [#allocation8]  }
  0x70   : > { %v241_v16 = vrot.slane %v1540_v15, %v240_v14  ;;  %966 = vmatprep.subr.bf16.mxu1 %v1312_v0  ;;  %v1111_v36 = vld [vmem:[#allocation5 + $0x70] sm:$0xff]   ;;  %v1112_v37 = vld [vmem:[#allocation5 + $0x78] sm:$0xff]   ;;  %v354_v49 = vrot.slane %v1540_v15, %v353_v46  ;;  %v359_v52 = vrot.slane %v1540_v15, %v358_v47  ;;  %v1117_v12 = vld [vmem:[#allocation5 + $0xa0] sm:$0xff]   ;;  %s1237_s7 = sshll.u32 %s1314_s5, 4  ;;  %s1238_s7 = int_to_ptr.vmem [resolvable:$false] %s1237_s7 }
  0x71   : > { %947 = vmatpush3.bf16.msra.mxu0 %v1098_v2  ;;  %v382_v57 = vrot.slane %v1540_v15, %v381_v56  ;;  %v1125_v56 = vld [vmem:[#allocation5 + $0xe0] sm:$0xff]   ;;  %p1235_p1 = pnand %p1234_p11, %p1663_p0  ;;  %s1239_s8 = scalar_lea.vmem %s1238_s7, 256 }
  0x72   : > { %948 = vmatprep.subr.bf16.mxu0 %v1312_v0  ;;  %p1240_p5 = scmp.lt.s32.totalorder %s1604_s24, %s1238_s7  ;;  %p1241_p9 = scmp.lt.s32.totalorder %s1239_s8, %s1233_s4 }
  0x73   : > { %967 = vmatpush3.bf16.msra.mxu1 %v1106_v31  ;;  %p1236_p3 = pneg %p1235_p1 }
  0x74   : > { %968 = vmatprep.subr.bf16.mxu1 %v1312_v0  ;;  %p1242_p12 = por %p1241_p9, %p1240_p5 }
  0x75   : > { %949 = vmatpush3.bf16.msra.mxu0 %v1099_v3 }
  0x76   : > { %950 = vmatprep.subr.bf16.mxu0 %v1312_v0  ;;  %p1243_p2 = pnand %p1242_p12, %p1236_p3 }
  0x77   : > { %969 = vmatpush3.bf16.msra.mxu1 %v1107_v32 }
  0x78   : > { %970 = vmatprep.subr.bf16.mxu1 %v1312_v0 }
  0x79   : > { %951 = vmatpush3.bf16.msra.mxu0 %v1100_v5 }
  0x7a   : > { %952 = vmatprep.subr.bf16.mxu0 %v1312_v0 }
  0x7b   : > { %971 = vmatpush3.bf16.msra.mxu1 %v1108_v33 }
  0x7c   : > { %972 = vmatprep.subr.bf16.mxu1 %v1312_v0 }
  0x7d   : > { %953 = vmatpush3.bf16.msra.mxu0 %v1101_v7 }
  0x7e   : > { %954 = vmatprep.subr.bf16.mxu0 %v1312_v0 }
  0x7f   : > { %973 = vmatpush3.bf16.msra.mxu1 %v1109_v34 }
  0x80   : > { %974 = vmatprep.subr.bf16.mxu1 %v1312_v0 }
  0x81   : > { %955 = vmatpush3.bf16.msra.mxu0 %v1102_v8  ;;  %v1113_v8 = vld [vmem:[#allocation5 + $0x80] sm:$0xff]  }
  0x82   : > { %956 = vmatprep.subr.bf16.mxu0 %v1312_v0 }
  0x83   : > { %975 = vmatpush3.bf16.msra.mxu1 %v1110_v35 }
  0x84   : > { %976 = vmatprep.subr.bf16.mxu1 %v1312_v0 }
  0x85   : > { %957 = vmatpush3.bf16.msra.mxu0 %v1103_v9  ;;  %v1114_v9 = vld [vmem:[#allocation5 + $0x88] sm:$0xff]  }
  0x86   : > { %958 = vmatprep.subr.bf16.mxu0 %v1312_v0 }
  0x87   : > { %977 = vmatpush3.bf16.msra.mxu1 %v1111_v36 }
  0x88   : > { %978 = vmatprep.subr.bf16.mxu1 %v1312_v0 }
  0x89   : > { %959 = vmatpush3.bf16.msra.mxu0 %v1104_v10  ;;  %v1115_v10 = vld [vmem:[#allocation5 + $0x90] sm:$0xff]  }
  0x8a   : > { %984 = vmatprep.subr.bf16.mxu0 %v1312_v0 }
  0x8b   : > { %979 = vmatpush3.bf16.msra.mxu1 %v1112_v37  ;;  %v1121_v37 = vld [vmem:[#allocation5 + $0xc0] sm:$0xff]  }
  0x8c   : > { %961 = vmatmul.mubr.msk.bf16.vlgmr.msra.gmra.mrb[0].mxu0 %vm877_vm2, %v878_v11  ;;  %1004 = vmatprep.subr.bf16.mxu1 %v1312_v0  ;;  %v1116_v11 = vld [vmem:[#allocation5 + $0x98] sm:$0xff]  }
  0x8d   : > { %1000 = vmatprep.mubr.msk.bf16.mxu0 %vm1313_vm0, %v1312_v0  ;;  %985 = vmatpush3.bf16.msra.mxu0 %v1113_v8 }
  0x8e   : > { %986 = vmatprep.subr.bf16.mxu0 %v1312_v0 }
  0x91   : > { %987 = vmatpush3.bf16.msra.mxu0 %v1114_v9 }
  0x92   : > { %988 = vmatprep.subr.bf16.mxu0 %v1312_v0 }
  0x95   : > { %989 = vmatpush3.bf16.msra.mxu0 %v1115_v10 }
  0x96   : > { %990 = vmatprep.subr.bf16.mxu0 %v1312_v0 }
  0x99   : > { %991 = vmatpush3.bf16.msra.mxu0 %v1116_v11 }
  0x9a   : > { %992 = vmatprep.subr.bf16.mxu0 %v1312_v0 }
  0x9d   : > { %993 = vmatpush3.bf16.msra.mxu0 %v1117_v12 }
  0x9e   : > { %994 = vmatprep.subr.bf16.mxu0 %v1312_v0 }
 0x15f   : > { %v324_v17 = vpop.f32.mrb[0].mxu0 }
 0x160   : > { %v325_v18 = vadd.f32 %v324_v17, %v241_v16  ;;  %v962_v19 = vpop.f32.mrb[1].mxu0  ;;  %v1118_v16 = vld [vmem:[#allocation5 + $0xa8] sm:$0xff]   ;;  %v1119_v17 = vld [vmem:[#allocation5 + $0xb0] sm:$0xff]  }
 0x161   : > { %v327_v20 = vpop.f32.mrb[2].mxu0  ;;  %995 = vmatpush3.bf16.msra.mxu0 %v1118_v16 }
 0x162   : > { %v330_v21 = vsub.f32 0.0, %v325_v18  ;;  %v963_v22 = vpop.f32.mrb[3].mxu0  ;;  %996 = vmatprep.subr.bf16.mxu0 %v1312_v0 }
 0x164   : > { %v331_v23 = vmul.f32 1.442695, %v330_v21 }
 0x165   : > { %997 = vmatpush3.bf16.msra.mxu0 %v1119_v17 }
 0x166   : > { %1129 = vpow2.f32 %v331_v23  ;;  %998 = vmatprep.subr.bf16.mxu0 %v1312_v0 }
 0x170   : > { %v1130_v24 = vpop.eup %1129 }
 0x171   : > { %v333_v25 = vadd.f32 1.0, %v1130_v24 }
 0x173   : > { %1131 = vrcp.f32 %v333_v25 }
 0x17d   : > { %v1132_v26 = vpop.eup %1131 }
 0x17e   : > { %v335_v27 = vmul.f32 %v1132_v26, %v325_v18  ;;  %v1120_v18 = vld [vmem:[#allocation5 + $0xb8] sm:$0xff]  }
 0x17f   : > { %999 = vmatpush3.bf16.msra.mxu0 %v1120_v18 }
 0x180   : > { %v1545_v28 = vadd.f32 %v335_v27, %v218_v6  ;;  %v494_v27 = vsub.s32 4, %v1537_v13 }
 0x182   : > { %337 = vadd.xlane.f32.xlu0 %v1545_v28  ;;  %v339_v29 = vmul.f32 %v1545_v28, %v1545_v28  ;;  %v495_v30 = vrot.slane %v1540_v15, %v494_v27 }
 0x186   : > { %340 = vadd.xlane.f32.xlu0 %v339_v29 }
 0x20f   : > { %v338_v38 = vpop.xlane.xlu0 %337 }
 0x210   : > { %v342_v39 = vmul.f32 0.03125, %v338_v38  ;;  %v522_v38 = vsub.s32 6, %v1537_v13 }
 0x212   : > { %v344_v41 = vmul.f32 %v342_v39, %v342_v39  ;;  %v347_v48 = vsub.f32 %v1545_v28, %v342_v39  ;;  %v523_v39 = vrot.slane %v1540_v15, %v522_v38 }
 0x213   : > { %v341_v40 = vpop.xlane.xlu0 %340 }
 0x214   : > { %v343_v42 = vmul.f32 0.03125, %v341_v40 }
 0x216   : > { %v345_v43 = vsub.f32 %v343_v42, %v344_v41 }
 0x218   : > { %v346_v44 = vmax.f32 %v345_v43, 0.0 }
 0x21a   : > { %v348_v45 = vadd.f32 1e-05, %v346_v44 }
 0x21c   : > { %1133 = vrsqrt.f32 %v348_v45 }
 0x226   : > { %v1134_v50 = vpop.eup %1133 }
 0x227   : > { %v350_v51 = vmul.f32 %v1134_v50, %v347_v48 }
 0x229   : > { %v355_v53 = vmul.f32 %v354_v49, %v350_v51 }
 0x22b   : > { %v360_v54 = vadd.f32 %v359_v52, %v355_v53  ;;  %v1122_v53 = vld [vmem:[#allocation5 + $0xc8] sm:$0xff]  }
 0x22d   : > { %v361_v55 = vpack.c.bf16 %v360_v54, %v360_v54  ;;  %v1123_v54 = vld [vmem:[#allocation5 + $0xd0] sm:$0xff]  }
 0x22f   : > { %981 = vmatmul.mubr.bf16.vlgmr.msra.gmra.mrb[0].mxu1 %v361_v55  ;;  %v1124_v55 = vld [vmem:[#allocation5 + $0xd8] sm:$0xff]  }
 0x230   : > { %1020 = vmatprep.mubr.msk.bf16.mxu1 %vm1313_vm0, %v1312_v0  ;;  %1005 = vmatpush3.bf16.msra.mxu1 %v1121_v37 }
 0x231   : > { %1006 = vmatprep.subr.bf16.mxu1 %v1312_v0 }
 0x234   : > { %1007 = vmatpush3.bf16.msra.mxu1 %v1122_v53 }
 0x235   : > { %1008 = vmatprep.subr.bf16.mxu1 %v1312_v0 }
 0x238   : > { %1009 = vmatpush3.bf16.msra.mxu1 %v1123_v54 }
 0x239   : > { %1010 = vmatprep.subr.bf16.mxu1 %v1312_v0 }
 0x23c   : > { %1011 = vmatpush3.bf16.msra.mxu1 %v1124_v55 }
 0x23d   : > { %1012 = vmatprep.subr.bf16.mxu1 %v1312_v0 }
 0x240   : > { %1013 = vmatpush3.bf16.msra.mxu1 %v1125_v56 }
 0x241   : > { %1014 = vmatprep.subr.bf16.mxu1 %v1312_v0 }
 0x302   : > { %v465_v58 = vpop.f32.mrb[0].mxu1 }
 0x303   : > { %v466_v59 = vadd.f32 %v465_v58, %v382_v57  ;;  %v982_v60 = vpop.f32.mrb[1].mxu1  ;;  %v1126_v57 = vld [vmem:[#allocation5 + $0xe8] sm:$0xff]   ;;  %v1127_v58 = vld [vmem:[#allocation5 + $0xf0] sm:$0xff]  }
 0x304   : > { %v468_v61 = vpop.f32.mrb[2].mxu1  ;;  %1015 = vmatpush3.bf16.msra.mxu1 %v1126_v57 }
 0x305   : > { %v471_v62 = vsub.f32 0.0, %v466_v59  ;;  %v983_v63 = vpop.f32.mrb[3].mxu1  ;;  %1016 = vmatprep.subr.bf16.mxu1 %v1312_v0 }
 0x307   : > { %v472_v1 = vmul.f32 1.442695, %v471_v62 }
 0x308   : > { %1017 = vmatpush3.bf16.msra.mxu1 %v1127_v58 }
 0x309   : > { %1135 = vpow2.f32 %v472_v1  ;;  %1018 = vmatprep.subr.bf16.mxu1 %v1312_v0 }
 0x313   : > { %v1136_v2 = vpop.eup %1135 }
 0x314   : > { %v474_v3 = vadd.f32 1.0, %v1136_v2 }
 0x316   : > { %1137 = vrcp.f32 %v474_v3 }
 0x320   : > { %v1138_v4 = vpop.eup %1137 }
 0x321   : > { %v476_v5 = vmul.f32 %v1138_v4, %v466_v59  ;;  %v1128_v59 = vld [vmem:[#allocation5 + $0xf8] sm:$0xff]  }
 0x322   : > { %1019 = vmatpush3.bf16.msra.mxu1 %v1128_v59 }
 0x323   : > { %v477_v6 = vadd.f32 %v476_v5, %v1545_v28  ;;  %v499_v28 = vsub.s32 5, %v1537_v13  ;;  %v634_v5 = vsub.s32 7, %v1537_v13 }
 0x325   : > { %478 = vadd.xlane.f32.xlu1 %v477_v6  ;;  %v480_v7 = vmul.f32 %v477_v6, %v477_v6  ;;  %v500_v33 = vrot.slane %v1540_v15, %v499_v28  ;;  %v635_v8 = vrot.slane %v1540_v15, %v634_v5 }
 0x329   : > { %481 = vadd.xlane.f32.xlu1 %v480_v7 }
 0x3b2   : > { %v479_v19 = vpop.xlane.xlu1 %478 }
 0x3b3   : > { %v483_v20 = vmul.f32 0.03125, %v479_v19 }
 0x3b5   : > { %v485_v22 = vmul.f32 %v483_v20, %v483_v20  ;;  %v488_v29 = vsub.f32 %v477_v6, %v483_v20  ;;  %v220_v6 = vld [vmem:[#allocation7 + $0x8] sm:$0xff] }
 0x3b6   : > { %v482_v21 = vpop.xlane.xlu1 %481  ;;  %v640_v0 = vrot.slane %v220_v6, %v240_v14  ;;  %v663_v17 = vrot.slane %v220_v6, %v353_v46 }
 0x3b7   : > { %v484_v23 = vmul.f32 0.03125, %v482_v21 }
 0x3b9   : > { %v486_v24 = vsub.f32 %v484_v23, %v485_v22 }
 0x3bb   : > { %v487_v25 = vmax.f32 %v486_v24, 0.0 }
 0x3bd   : > { %v489_v26 = vadd.f32 1e-05, %v487_v25 }
 0x3bf   : > { %1139 = vrsqrt.f32 %v489_v26 }
 0x3c9   : > { %v1140_v31 = vpop.eup %1139 }
 0x3ca   : > { %v491_v32 = vmul.f32 %v1140_v31, %v488_v29 }
 0x3cc   : > { %v496_v34 = vmul.f32 %v495_v30, %v491_v32 }
 0x3ce   : > { %v501_v35 = vadd.f32 %v500_v33, %v496_v34 }
 0x3d0   : > { %v502_v36 = vpack.c.bf16 %v501_v35, %v501_v35 }
 0x3d2   : > { %1001 = vmatmul.mubr.bf16.vlgmr.msra.gmra.mrb[4].mxu0 %v502_v36 }
 0x4a5   : > { %v606_v40 = vpop.f32.mrb[4].mxu0 }
 0x4a6   : > { %v607_v41 = vadd.f32 %v606_v40, %v523_v39  ;;  %v1002_v42 = vpop.f32.mrb[5].mxu0 }
 0x4a7   : > { %v609_v43 = vpop.f32.mrb[6].mxu0 }
 0x4a8   : > { %v612_v44 = vsub.f32 0.0, %v607_v41  ;;  %v1003_v45 = vpop.f32.mrb[7].mxu0 }
 0x4aa   : > { %v613_v47 = vmul.f32 1.442695, %v612_v44 }
 0x4ac   : > { %1141 = vpow2.f32 %v613_v47 }
 0x4b6   : > { %v1142_v48 = vpop.eup %1141 }
 0x4b7   : > { %v615_v49 = vadd.f32 1.0, %v1142_v48 }
 0x4b9   : > { %1143 = vrcp.f32 %v615_v49 }
 0x4c3   : > { %v1144_v50 = vpop.eup %1143 }
 0x4c4   : > { %v617_v51 = vmul.f32 %v1144_v50, %v607_v41 }
 0x4c6   : > { %618 = vadd.xlane.f32.xlu0 %v617_v51  ;;  %v620_v52 = vmul.f32 %v617_v51, %v617_v51 }
 0x4c8   : > { %621 = vadd.xlane.f32.xlu1 %v620_v52 }
 0x553   : > { %v619_v60 = vpop.xlane.xlu0 %618 }
 0x554   : > { %v623_v61 = vmul.f32 0.015625, %v619_v60 }
 0x555   : > { %v622_v62 = vpop.xlane.xlu1 %621 }
 0x556   : > { %v625_v63 = vmul.f32 %v623_v61, %v623_v61  ;;  %v624_v1 = vmul.f32 0.015625, %v622_v62  ;;  %v628_v7 = vsub.f32 %v617_v51, %v623_v61 }
 0x558   : > { %v626_v2 = vsub.f32 %v624_v1, %v625_v63 }
 0x55a   : > { %v627_v3 = vmax.f32 %v626_v2, 0.0 }
 0x55c   : > { %v629_v4 = vadd.f32 1e-05, %v627_v3 }
 0x55e   : > { %1145 = vrsqrt.f32 %v629_v4 }
 0x568   : > { %v1146_v9 = vpop.eup %1145 }
 0x569   : > { %v631_v10 = vmul.f32 %v1146_v9, %v628_v7 }
 0x56b   : > { %v636_v11 = vmul.f32 %v635_v8, %v631_v10 }
 0x56d   : > { %v641_v12 = vadd.f32 %v640_v0, %v636_v11 }
 0x56f   : > { %v642_v16 = vpack.c.bf16 %v641_v12, %v641_v12 }
 0x571   : > { %1021 = vmatmul.mubr.bf16.vlgmr.msra.gmra.mrb[4].mxu1 %v642_v16 }
 0x644   : > { %v746_v18 = vpop.f32.mrb[4].mxu1 }
 0x645   : > { %v747_v15 = vadd.f32 %v746_v18, %v663_v17  ;;  %v1022_v19 = vpop.f32.mrb[5].mxu1 }
 0x646   : > { %v749_v13 = vpop.f32.mrb[6].mxu1 }
 0x647   : > { %v1023_v14 = vpop.f32.mrb[7].mxu1  ;;  %753 = vst.msk [vmem:[%s214_s20] sm:$0xff] %vm752_vm3, %v747_v15 }
 0x648   : > { %1246 = shalt.err (!%p1243_p2)
}
 0x649   : > { %s1247_s23 = scalar_lea.hbm %s1602_s22, 128  ;;  %s1251_s17 = scalar_lea.hbm %s1649_s3, 256 }
 0x64a   : > { %p1248_p13 = scmp.ne.s32.totalorder %s1602_s22, %s1247_s23  ;;  %p1252_p4 = scmp.lt.u32.totalorder %s1602_s22, %s1649_s3 }
 0x64b   : > { %p1253_p7 = scmp.lt.u32.totalorder %s1251_s17, %s1247_s23  ;;  %p1255_p11 = scmp.lt.u32.totalorder %s1247_s23, %s1602_s22 }
 0x64c   : > { %p1249_p6 = pnand %p1248_p13, %p1663_p0 }
 0x64d   : > { %p1254_p8 = por %p1253_p7, %p1252_p4 }
 0x64e   : > { %p1250_p10 = pneg %p1249_p6 }
 0x64f   : > { %p1256_p1 = por %p1255_p11, %p1254_p8 }
 0x651   : > { %p1257_p3 = pnand %p1256_p1, %p1250_p10 }
 0x653   : > { %1260 = shalt.err (!%p1257_p3)
}
 0x654   : > { %1034 = dma.vmem_to_hbm [thread:$0]  (%p1663_p0), %s1604_s24, 128, %s1602_s22, %s755_s16  }
 0x655 PF: > { %s780_s29 = sand.u32 1, %s1291_s12   ;;  %p1664_p5 = scmp.ne.s32.totalorder %s1654_s19, 0 }
 0x656   : > { %p1665_p9 = scmp.ge.s32.totalorder %s1303_s15, 2  ;;  %s781_s30 = scalar_lea.sflag [#allocation4], %s780_s29 }
 0x658   : > { %p1048_p12 = pnand %p1665_p9, %p1664_p5 }
 0x65a   : > { %1286 = dma.done.wait (!%p1048_p12), %s781_s30, 128  }
 0x65b   : > { %1288 = vsyncadd (!%p1048_p12), %s781_s30, 4294967168  ;;  %p17_p2 = scmp.ge.s32.totalorder %s1445_s6, 4   ;;  %s1666_s12 = smov %s1295_s13 }
 0x65c   : > { %s1667_s13 = smov %s1299_s14  ;;  %s1668_s14 = smov %s1454_s9 }
 0x65d   : > { %s1669_s15 = smov %s1445_s6  ;;  %19 = sbr.rel (!%p17_p2) target bundleno = 6 (0x6), region = 88 }
 0x664   :  { %786 = vsyncpa [#allocation3], 1 }
 0x665   :  { %788 = vsyncpa [#allocation3 + $0x1], 1 }
 0x666   :  { %789 = vsyncpa [#allocation6], 1 }
 0x667   :  { %790 = vsyncpa [#allocation4], 1 }
 0x668   :  { %792 = vsyncpa [#allocation4 + $0x1], 1 }

</bundles_post_ra>
